<compile_context>
chip_gen: v5e
topology: v5e:2x2
jax: 0.10.0
libtpu: 0.0.40
codegen_flags: <defaults>
</compile_context>

<pallas_src>
import functools

import jax
import jax.numpy as jnp
from jax.experimental import pallas as pl
from jax.experimental.pallas import tpu as pltpu


def _round_up(x, m):
    return ((x + m - 1) // m) * m


def _lighting_kernel(inner_ref, tl_ref, w1_ref, w2_ref, pw1_ref, pw2_ref,
                     prelu_ref, out_ref, light_ref, *, nc_input):
    """One grid step == one batch element (channels-first layout).

    inner_ref : (1, C_SLAB, HW)      first channel slab of innerFeat
    tl_ref    : (1, ncOutput, 1)     target_light (column)
    w1_ref    : (ncMiddle, C_SLAB)   predict_FC1, cols >= nc_input zeroed
    w2_ref    : (ncOutput, ncMiddle) predict_FC2
    pw1_ref   : (ncMiddle, ncOutput) post_FC1
    pw2_ref   : (C_SLAB, ncMiddle)   post_FC2, rows >= nc_input zeroed
    prelu_ref : (2,) in SMEM         [predict PReLU slope, post PReLU slope]
    out_ref   : (1, C_SLAB, HW)      aliased with innerFeat (in-place update)
    light_ref : (1, ncOutput, 1)
    """
    x = inner_ref[0]                                   # (C_SLAB, HW) f32
    c_slab, hw = x.shape

    # --- predict branch: spatial mean -> FC1 -> PReLU -> FC2 ----------------
    # Per-channel spatial mean on the MXU; channels >= nc_input are killed by
    # the zero-padded columns of w1, so no channel slicing is needed.
    ones_col = jnp.ones((hw, 1), jnp.float32)
    mean_col = jnp.dot(x, ones_col, preferred_element_type=jnp.float32) * (1.0 / hw)
    h = jnp.dot(w1_ref[...], mean_col, preferred_element_type=jnp.float32)   # (ncMiddle, 1)
    a1 = prelu_ref[0]
    h = jnp.where(h >= 0.0, h, a1 * h)                                        # PReLU
    light = jnp.dot(w2_ref[...], h, preferred_element_type=jnp.float32)       # (ncOutput, 1)
    light_ref[0] = light.astype(light_ref.dtype)

    # --- post branch: target_light -> FC1 -> PReLU -> FC2 -> ReLU -----------
    tl = tl_ref[0]                                                            # (ncOutput, 1)
    u = jnp.dot(pw1_ref[...], tl, preferred_element_type=jnp.float32)         # (ncMiddle, 1)
    a2 = prelu_ref[1]
    u = jnp.where(u >= 0.0, u, a2 * u)                                        # PReLU
    up = jnp.maximum(                                                         # ReLU
        jnp.dot(pw2_ref[...], u, preferred_element_type=jnp.float32), 0.0)    # (C_SLAB, 1)

    # --- write-back: channels < nc_input <- upFeat broadcast over HW,
    #     remaining slab channels pass through unchanged.  One lane-dense
    #     full-slab store; the select only covers the tiny slab. -------------
    ch = jax.lax.broadcasted_iota(jnp.int32, (c_slab, hw), 0)
    up_b = jnp.broadcast_to(up, (c_slab, hw))
    out_ref[0] = jnp.where(ch < nc_input, up_b, x).astype(out_ref.dtype)


def lighting_net_forward(inner_feat, target_light, params,
                         nc_input, nc_output, nc_middle):
    """inner_feat: (N, Ctot, H, W) NCHW (PyTorch convention), Ctot >= nc_input.
       target_light: (N, nc_output, 1, 1)."""
    N, ctot, H, W = inner_feat.shape
    hw = H * W
    # Sublane-aligned channel slab that covers channels [0, nc_input).
    c_slab = min(_round_up(nc_input, 8), ctot)

    # Free layout changes: pure reshapes, no transposes, no data movement.
    inner_flat = inner_feat.reshape(N, ctot, hw).astype(jnp.float32)
    tl = target_light.reshape(N, nc_output, 1).astype(jnp.float32)

    w1 = params["predict_FC1"].astype(jnp.float32)    # (ncMiddle, ncInput)
    w2 = params["predict_FC2"].astype(jnp.float32)    # (ncOutput, ncMiddle)
    pw1 = params["post_FC1"].astype(jnp.float32)      # (ncMiddle, ncOutput)
    pw2 = params["post_FC2"].astype(jnp.float32)      # (ncInput, ncMiddle)

    # Zero-pad the slab-facing weights so the kernel never slices the channel axis:
    #  - w1p columns >= nc_input are zero -> channels past ncInput never leak into the mean
    #  - pw2p rows   >= nc_input are zero -> upFeat rows past ncInput are zero (masked anyway)
    w1p = jnp.zeros((nc_middle, c_slab), jnp.float32).at[:, :nc_input].set(w1)
    pw2p = jnp.zeros((c_slab, nc_middle), jnp.float32).at[:nc_input, :].set(pw2)

    prelu_slopes = jnp.stack([
        params["predict_prelu"].reshape(()),
        params["post_prelu"].reshape(()),
    ]).astype(jnp.float32)                             # (2,) scalars -> SMEM

    kernel = functools.partial(_lighting_kernel, nc_input=nc_input)

    out_flat, light = pl.pallas_call(
        kernel,
        grid=(N,),
        in_specs=[
            # innerFeat: only the first channel slab is ever DMA'd; channels
            # >= c_slab stay in HBM and reach the output through the alias.
            pl.BlockSpec((1, c_slab, hw), lambda n: (n, 0, 0)),
            pl.BlockSpec((1, nc_output, 1), lambda n: (n, 0, 0)),
            pl.BlockSpec((nc_middle, c_slab), lambda n: (0, 0)),
            pl.BlockSpec((nc_output, nc_middle), lambda n: (0, 0)),
            pl.BlockSpec((nc_middle, nc_output), lambda n: (0, 0)),
            pl.BlockSpec((c_slab, nc_middle), lambda n: (0, 0)),
            pl.BlockSpec(memory_space=pltpu.MemorySpace.SMEM),   # PReLU slopes
        ],
        out_specs=[
            pl.BlockSpec((1, c_slab, hw), lambda n: (n, 0, 0)),
            pl.BlockSpec((1, nc_output, 1), lambda n: (n, 0, 0)),
        ],
        out_shape=[
            jax.ShapeDtypeStruct((N, ctot, hw), jnp.float32),
            jax.ShapeDtypeStruct((N, nc_output, 1), jnp.float32),
        ],
        # In-place channel overwrite, matching the PyTorch semantics.
        input_output_aliases={0: 0},
        compiler_params=pltpu.CompilerParams(dimension_semantics=("parallel",)),
        # NOTE (v7x): at much larger H*W (or N == 1) add an HW-tile grid axis
        # marked "parallel" and/or set vmem_limit_bytes; at these slab sizes the
        # VMEM footprint is a few hundred KiB, well within every generation.
    )(inner_flat, tl, w1p, w2, pw1, pw2p, prelu_slopes)

    inner_out = out_flat.reshape(N, ctot, H, W)
    light_out = light.reshape(N, nc_output, 1, 1)
    return inner_out, light_out


def _reference_forward(inner_feat, target_light, params, nc_input):
    """Pure-JAX reference matching the PyTorch forward exactly (NCHW)."""
    x = inner_feat[:, :nc_input, :, :]
    feat = x.mean(axis=(2, 3), keepdims=True)                       # (N, ncInput, 1, 1)

    def conv1x1(z, w):   # w: (Cout, Cin), z: (N, Cin, 1, 1)
        return jnp.einsum("oc,nchw->nohw", w, z)

    def prelu(z, a):
        return jnp.where(z >= 0.0, z, a * z)

    light = prelu(conv1x1(feat, params["predict_FC1"]), params["predict_prelu"])
    light = conv1x1(light, params["predict_FC2"])

    up = prelu(conv1x1(target_light, params["post_FC1"]), params["post_prelu"])
    up = jnp.maximum(conv1x1(up, params["post_FC2"]), 0.0)          # (N, ncInput, 1, 1)

    N, _, H, W = inner_feat.shape
    up = jnp.broadcast_to(up, (N, nc_input, H, W))
    inner_out = inner_feat.at[:, :nc_input, :, :].set(up)
    return inner_out, light


if __name__ == "__main__":
    # Small shapes consistent with the module: innerFeat has Ctot >= ncInput
    # channels (Ctot > slab so the alias/pass-through path is exercised);
    # target_light is (N, ncOutput, 1, 1).
    nc_input, nc_output, nc_middle = 4, 4, 8
    N, Ctot, H, W = 2, 16, 16, 16

    key = jax.random.PRNGKey(0)
    k_if, k_tl, k1, k2, k3, k4 = jax.random.split(key, 6)

    inner_feat = jax.random.normal(k_if, (N, Ctot, H, W), jnp.float32)
    target_light = jax.random.normal(k_tl, (N, nc_output, 1, 1), jnp.float32)

    params = {
        "predict_FC1": 0.1 * jax.random.normal(k1, (nc_middle, nc_input), jnp.float32),
        "predict_FC2": 0.1 * jax.random.normal(k2, (nc_output, nc_middle), jnp.float32),
        "post_FC1":    0.1 * jax.random.normal(k3, (nc_middle, nc_output), jnp.float32),
        "post_FC2":    0.1 * jax.random.normal(k4, (nc_input, nc_middle), jnp.float32),
        "predict_prelu": jnp.array(0.25, jnp.float32),   # nn.PReLU() default init
        "post_prelu":    jnp.array(0.25, jnp.float32),
    }

    fwd = jax.jit(functools.partial(
        lighting_net_forward,
        nc_input=nc_input, nc_output=nc_output, nc_middle=nc_middle))

    inner_out, light_out = fwd(inner_feat, target_light, params)
    jax.block_until_ready((inner_out, light_out))

    ref_inner, ref_light = _reference_forward(inner_feat, target_light, params, nc_input)
    assert inner_out.shape == (N, Ctot, H, W)
    assert light_out.shape == (N, nc_output, 1, 1)
    assert jnp.allclose(inner_out, ref_inner, atol=1e-5, rtol=1e-5)
    assert jnp.allclose(light_out, ref_light, atol=1e-5, rtol=1e-5)

    print("KERNEL_OK")
</pallas_src>

<mosaic_0001>
module attributes {stable_mosaic.version = 11 : i64} {
  func.func @_lighting_kernel(%arg0: i32, %arg1: memref<1x8x256xf32, #tpu.memory_space<vmem>>, %arg2: memref<1x4x1xf32, #tpu.memory_space<vmem>>, %arg3: memref<8x8xf32, #tpu.memory_space<vmem>>, %arg4: memref<4x8xf32, #tpu.memory_space<vmem>>, %arg5: memref<8x4xf32, #tpu.memory_space<vmem>>, %arg6: memref<8x8xf32, #tpu.memory_space<vmem>>, %arg7: memref<2xf32, #tpu.memory_space<smem>>, %arg8: memref<1x8x256xf32, #tpu.memory_space<vmem>>, %arg9: memref<1x4x1xf32, #tpu.memory_space<vmem>>) attributes {dimension_semantics = [#tpu.dimension_semantics<parallel>], iteration_bounds = array<i64: 2>, scalar_prefetch = 0 : i64, scratch_operands = 0 : i64, tpu.core_type = #tpu.core_type<tc>, window_params = [{transform_indices = @transform_0, window_bounds = array<i64: 1, 8, 256>}, {transform_indices = @transform_1, window_bounds = array<i64: 1, 4, 1>}, {pipeline_mode = #tpu.pipeline_mode<synchronous>, transform_indices = @transform_2, window_bounds = array<i64: 8, 8>}, {pipeline_mode = #tpu.pipeline_mode<synchronous>, transform_indices = @transform_3, window_bounds = array<i64: 4, 8>}, {pipeline_mode = #tpu.pipeline_mode<synchronous>, transform_indices = @transform_4, window_bounds = array<i64: 8, 4>}, {pipeline_mode = #tpu.pipeline_mode<synchronous>, transform_indices = @transform_5, window_bounds = array<i64: 8, 8>}, {transform_indices = @transform_6, window_bounds = array<i64: 2>}, {transform_indices = @transform_7, window_bounds = array<i64: 1, 8, 256>}, {transform_indices = @transform_8, window_bounds = array<i64: 1, 4, 1>}]} {
    %c0 = arith.constant 0 : index
    %c0_0 = arith.constant 0 : index
    %c0_1 = arith.constant 0 : index
    %0 = vector.load %arg1[%c0, %c0_0, %c0_1] : memref<1x8x256xf32, #tpu.memory_space<vmem>>, vector<1x8x256xf32>
    %1 = vector.shape_cast %0 : vector<1x8x256xf32> to vector<8x256xf32>
    %cst = arith.constant 1.000000e+00 : f32
    %2 = vector.broadcast %cst : f32 to vector<256x1xf32>
    %cst_2 = arith.constant dense<0.000000e+00> : vector<8x1xf32>
    %3 = tpu.matmul %1, %2, %cst_2 {dimension_numbers = #tpu.dot_dimension_numbers<[1], [0], [0], [1], [0, 0, 1, 1], [], []>} : vector<8x256xf32>, vector<256x1xf32>, vector<8x1xf32> -> vector<8x1xf32>
    %cst_3 = arith.constant 3.906250e-03 : f32
    %4 = vector.broadcast %cst_3 : f32 to vector<8x1xf32>
    %5 = arith.mulf %3, %4 : vector<8x1xf32>
    %c0_4 = arith.constant 0 : index
    %c0_5 = arith.constant 0 : index
    %6 = vector.load %arg3[%c0_4, %c0_5] : memref<8x8xf32, #tpu.memory_space<vmem>>, vector<8x8xf32>
    %cst_6 = arith.constant dense<0.000000e+00> : vector<8x1xf32>
    %7 = tpu.matmul %6, %5, %cst_6 {dimension_numbers = #tpu.dot_dimension_numbers<[1], [0], [0], [1], [0, 0, 1, 1], [], []>} : vector<8x8xf32>, vector<8x1xf32>, vector<8x1xf32> -> vector<8x1xf32>
    %c0_7 = arith.constant 0 : index
    %8 = memref.load %arg7[%c0_7] : memref<2xf32, #tpu.memory_space<smem>>
    %cst_8 = arith.constant 0.000000e+00 : f32
    %9 = vector.broadcast %cst_8 : f32 to vector<8x1xf32>
    %10 = arith.cmpf oge, %7, %9 : vector<8x1xf32>
    %11 = vector.broadcast %8 : f32 to vector<8x1xf32>
    %12 = arith.mulf %11, %7 : vector<8x1xf32>
    %13 = arith.select %10, %7, %12 : vector<8x1xi1>, vector<8x1xf32>
    %c0_9 = arith.constant 0 : index
    %c0_10 = arith.constant 0 : index
    %14 = vector.load %arg4[%c0_9, %c0_10] : memref<4x8xf32, #tpu.memory_space<vmem>>, vector<4x8xf32>
    %cst_11 = arith.constant dense<0.000000e+00> : vector<4x1xf32>
    %15 = tpu.matmul %14, %13, %cst_11 {dimension_numbers = #tpu.dot_dimension_numbers<[1], [0], [0], [1], [0, 0, 1, 1], [], []>} : vector<4x8xf32>, vector<8x1xf32>, vector<4x1xf32> -> vector<4x1xf32>
    %c0_12 = arith.constant 0 : index
    %c0_13 = arith.constant 0 : index
    %c0_14 = arith.constant 0 : index
    %16 = vector.load %arg9[%c0_12, %c0_13, %c0_14] : memref<1x4x1xf32, #tpu.memory_space<vmem>>, vector<1x4x1xf32>
    %17 = vector.shape_cast %16 : vector<1x4x1xf32> to vector<4x1xf32>
    %18 = vector.shape_cast %15 : vector<4x1xf32> to vector<1x4x1xf32>
    tpu.vector_store %arg9[%c0_12, %c0_13, %c0_14], %18 {strides = array<i32>} : memref<1x4x1xf32, #tpu.memory_space<vmem>>, vector<1x4x1xf32>,
    %c0_15 = arith.constant 0 : index
    %c0_16 = arith.constant 0 : index
    %c0_17 = arith.constant 0 : index
    %19 = vector.load %arg2[%c0_15, %c0_16, %c0_17] : memref<1x4x1xf32, #tpu.memory_space<vmem>>, vector<1x4x1xf32>
    %20 = vector.shape_cast %19 : vector<1x4x1xf32> to vector<4x1xf32>
    %c0_18 = arith.constant 0 : index
    %c0_19 = arith.constant 0 : index
    %21 = vector.load %arg5[%c0_18, %c0_19] : memref<8x4xf32, #tpu.memory_space<vmem>>, vector<8x4xf32>
    %cst_20 = arith.constant dense<0.000000e+00> : vector<8x1xf32>
    %22 = tpu.matmul %21, %20, %cst_20 {dimension_numbers = #tpu.dot_dimension_numbers<[1], [0], [0], [1], [0, 0, 1, 1], [], []>} : vector<8x4xf32>, vector<4x1xf32>, vector<8x1xf32> -> vector<8x1xf32>
    %c1 = arith.constant 1 : index
    %23 = memref.load %arg7[%c1] : memref<2xf32, #tpu.memory_space<smem>>
    %cst_21 = arith.constant 0.000000e+00 : f32
    %24 = vector.broadcast %cst_21 : f32 to vector<8x1xf32>
    %25 = arith.cmpf oge, %22, %24 : vector<8x1xf32>
    %26 = vector.broadcast %23 : f32 to vector<8x1xf32>
    %27 = arith.mulf %26, %22 : vector<8x1xf32>
    %28 = arith.select %25, %22, %27 : vector<8x1xi1>, vector<8x1xf32>
    %c0_22 = arith.constant 0 : index
    %c0_23 = arith.constant 0 : index
    %29 = vector.load %arg6[%c0_22, %c0_23] : memref<8x8xf32, #tpu.memory_space<vmem>>, vector<8x8xf32>
    %cst_24 = arith.constant dense<0.000000e+00> : vector<8x1xf32>
    %30 = tpu.matmul %29, %28, %cst_24 {dimension_numbers = #tpu.dot_dimension_numbers<[1], [0], [0], [1], [0, 0, 1, 1], [], []>} : vector<8x8xf32>, vector<8x1xf32>, vector<8x1xf32> -> vector<8x1xf32>
    %cst_25 = arith.constant 0.000000e+00 : f32
    %31 = vector.broadcast %cst_25 : f32 to vector<8x1xf32>
    %32 = arith.maximumf %30, %31 : vector<8x1xf32>
    %33 = tpu.iota {dimensions = array<i32: 0>} : vector<8x256xi32>
    %34 = vector.shape_cast %32 : vector<8x1xf32> to vector<8x1xf32>
    %35 = vector.broadcast %34 : vector<8x1xf32> to vector<8x256xf32>
    %c4_i32 = arith.constant 4 : i32
    %36 = vector.broadcast %c4_i32 : i32 to vector<8x256xi32>
    %37 = arith.cmpi slt, %33, %36 : vector<8x256xi32>
    %38 = arith.select %37, %35, %1 : vector<8x256xi1>, vector<8x256xf32>
    %c0_26 = arith.constant 0 : index
    %c0_27 = arith.constant 0 : index
    %c0_28 = arith.constant 0 : index
    %39 = vector.load %arg8[%c0_26, %c0_27, %c0_28] : memref<1x8x256xf32, #tpu.memory_space<vmem>>, vector<1x8x256xf32>
    %40 = vector.shape_cast %39 : vector<1x8x256xf32> to vector<8x256xf32>
    %41 = vector.shape_cast %38 : vector<8x256xf32> to vector<1x8x256xf32>
    tpu.vector_store %arg8[%c0_26, %c0_27, %c0_28], %41 {strides = array<i32>} : memref<1x8x256xf32, #tpu.memory_space<vmem>>, vector<1x8x256xf32>,
    return
  }
  func.func @transform_0(%arg0: i32) -> (i32, i32, i32) {
    %c0_i32 = arith.constant 0 : i32
    %c0_i32_0 = arith.constant 0 : i32
    %c0_i32_1 = arith.constant 0 : i32
    return %arg0, %c0_i32, %c0_i32_0 : i32, i32, i32
  }
  func.func @transform_1(%arg0: i32) -> (i32, i32, i32) {
    %c0_i32 = arith.constant 0 : i32
    %c0_i32_0 = arith.constant 0 : i32
    %c0_i32_1 = arith.constant 0 : i32
    return %arg0, %c0_i32, %c0_i32_0 : i32, i32, i32
  }
  func.func @transform_2(%arg0: i32) -> (i32, i32) {
    %c0_i32 = arith.constant 0 : i32
    %c0_i32_0 = arith.constant 0 : i32
    %c0_i32_1 = arith.constant 0 : i32
    return %c0_i32, %c0_i32_0 : i32, i32
  }
  func.func @transform_3(%arg0: i32) -> (i32, i32) {
    %c0_i32 = arith.constant 0 : i32
    %c0_i32_0 = arith.constant 0 : i32
    %c0_i32_1 = arith.constant 0 : i32
    return %c0_i32, %c0_i32_0 : i32, i32
  }
  func.func @transform_4(%arg0: i32) -> (i32, i32) {
    %c0_i32 = arith.constant 0 : i32
    %c0_i32_0 = arith.constant 0 : i32
    %c0_i32_1 = arith.constant 0 : i32
    return %c0_i32, %c0_i32_0 : i32, i32
  }
  func.func @transform_5(%arg0: i32) -> (i32, i32) {
    %c0_i32 = arith.constant 0 : i32
    %c0_i32_0 = arith.constant 0 : i32
    %c0_i32_1 = arith.constant 0 : i32
    return %c0_i32, %c0_i32_0 : i32, i32
  }
  func.func @transform_6(%arg0: i32) -> i32 {
    %c0_i32 = arith.constant 0 : i32
    %c0_i32_0 = arith.constant 0 : i32
    return %c0_i32 : i32
  }
  func.func @transform_7(%arg0: i32) -> (i32, i32, i32) {
    %c0_i32 = arith.constant 0 : i32
    %c0_i32_0 = arith.constant 0 : i32
    %c0_i32_1 = arith.constant 0 : i32
    return %arg0, %c0_i32, %c0_i32_0 : i32, i32, i32
  }
  func.func @transform_8(%arg0: i32) -> (i32, i32, i32) {
    %c0_i32 = arith.constant 0 : i32
    %c0_i32_0 = arith.constant 0 : i32
    %c0_i32_1 = arith.constant 0 : i32
    return %arg0, %c0_i32, %c0_i32_0 : i32, i32, i32
  }
}

</mosaic_0001>

<bundles_post_ra>
// kernel: lighting_net_forward.1
= control target key start
LH: loop header
LB: loop body
LE: loop exit
PB: predicated region body
PF: predicated region fallthrough
CT: control target
= control target key end

     0   :  { %14 = vsyncpa [#allocation3], 0  ;;  %s749_s27 = smov 0   ;;  %s807_s0 = inlined_call_operand.vmem [shape: f32[2,16,256], index: 0, kind: input, shape index: {}, may-alias: {0,7}]   ;;  %s808_s1 = inlined_call_operand.vmem [shape: f32[2,4,1], index: 1, kind: input, shape index: {}]   ;;  %s809_s2 = inlined_call_operand.vmem [shape: f32[8,8], index: 2, kind: input, shape index: {}]   ;;  %s810_s3 = inlined_call_operand.vmem [shape: f32[4,8], index: 3, kind: input, shape index: {}]   ;;  %s811_s4 = inlined_call_operand.vmem [shape: f32[8,4], index: 4, kind: input, shape index: {}]   ;;  %s812_s5 = inlined_call_operand.vmem [shape: f32[8,8], index: 5, kind: input, shape index: {}]   ;;  %s813_s6 = inlined_call_operand.vmem [shape: f32[2], index: 6, kind: input, shape index: {}]   ;;  %s814_s7 = inlined_call_operand.vmem [shape: f32[2,16,256], index: 7, kind: output, shape index: {0}, may-alias: {0,7}]   ;;  %s815_s8 = inlined_call_operand.vmem [shape: f32[2,4,1], index: 8, kind: output, shape index: {1}]  }
   0x1 LB: > { %s755_s28 = sadd.s32 4294967295, %s699_s27   ;;  %p631_p0 = scmp.ge.s32.totalorder %s699_s27, 1  ;;  %s699_s27 = sphi %s749_s27, %s20_s27  }
   0x2   : > { %p234_p1 = scmp.lt.s32.totalorder %s699_s27, 3  ;;  %s258_s9 = sshll.u32 %s813_s6, 4  ;;  %s259_s9 = int_to_ptr.vmem [resolvable:$true] %s258_s9 }
   0x3   : > { %p660_p3 = scmp.eq.s32.totalorder %s755_s28, 0  ;;  %s701_s10 = smov [#allocation2]  }
   0x4   : > { %p235_p2 = pnand %p631_p0, %p234_p1 }
   0x6   : > { %p656_p4 = pneg %p235_p2  ;;  %286 = sbr.rel (%p235_p2) target bundleno = 573 (0x23d), region = 48 }
   0x8   : > { %p657_p5 = pnand %p660_p3, %p656_p4 }
   0xa   : > { %659 = dma.vmem_to_smem (!%p657_p5), %s259_s9, 16, %s701_s10, [#allocation3]  }
   0xb   : > { %694 = dma.done.wait (%p660_p3), [#allocation3], 16  }
   0xc   : > { %696 = vsyncadd (%p660_p3), [#allocation3], 4294967280 }
   0xd   : > { %293 = sfence }
   0xe   : > { %v702_v0 = vmov 1.0   ;;  %p330_p6 = scmp.lt.s32.totalorder %s755_s28, 1  ;;  %v391_v7 = vld [vmem:[%s809_s2] sm:$0xff]  ;;  %vm392_vm0 = vcmask 64512   ;;  %vm453_vm1 = vcmask 1043456   ;;  %vm449_vm2 = vcmask 31744  }
   0xf   : > { %350 = vmatpush.msra.mxu0 %v702_v0  ;;  %370 = vmatpush.msra.mxu1 %v702_v0  ;;  %v448_v9 = vld [vmem:[%s811_s4] sm:$0xff]  ;;  %s416_s23 = sld [smem:[#allocation2]]  ;;  %v703_v20 = vmov 0   ;;  %vm445_vm5 = vcmask 3072   ;;  %v507_v24 = vlaneseq }
  0x10   : > { %s817_s28 = smov (!%p330_p6, %s755_s28), 1  ;;  %s646_s24 = sld [smem:[#allocation2 + $0x1]]  ;;  %v421_v13 = vld [vmem:[%s810_s3] sm:$0xf]  ;;  %673 = vset.pattern.permute.xlu0 %v703_v20 }
  0x11   : > { %351 = vmatpush.msra.mxu0 %v702_v0  ;;  %371 = vmatpush.msra.mxu1 %v702_v0  ;;  %s650_s11 = sshll.u32 %s817_s28, 5  ;;  %s638_s15 = sshll.u32 %s817_s28, 2  ;;  %v482_v18 = vld [vmem:[%s812_s5] sm:$0xff]  ;;  %v508_v25 = vshrl.u32 %v507_v24, 7 }
  0x12   : > { %s334_s14 = scalar_lea.vmem %s807_s0, %s650_s11  ;;  %s338_s18 = scalar_lea.vmem %s808_s1, %s638_s15 }
  0x13   : > { %352 = vmatpush.msra.mxu0 %v702_v0  ;;  %372 = vmatpush.msra.mxu1 %v702_v0  ;;  %v348_v1 = vld [vmem:[%s334_s14] sm:$0xff]  ;;  %v349_v2 = vld [vmem:[%s334_s14 + $0x8] sm:$0xff]  ;;  %s347_s12 = scalar_lea.vmem %s815_s8, %s638_s15  ;;  %vm514_vm6 = vcmp.lt.s32.totalorder %v508_v25, 4  ;;  %s343_s16 = scalar_lea.vmem %s814_s7, %s650_s11 }
  0x14   : > { %v447_v8 = vld [vmem:[%s338_s18] sm:$0xf] }
  0x15   : > { %353 = vmatpush.msra.mxu0 %v702_v0  ;;  %373 = vmatpush.msra.mxu1 %v702_v0  ;;  %v418_v10 = vstv %s416_s23 }
  0x16   : > { %v479_v15 = vstv %s646_s24 }
  0x17   : > { %354 = vmatpush.msra.mxu0 %v702_v0  ;;  %374 = vmatpush.msra.mxu1 %v702_v0 }
  0x19   : > { %355 = vmatpush.msra.mxu0 %v702_v0  ;;  %375 = vmatpush.msra.mxu1 %v702_v0 }
  0x1b   : > { %356 = vmatpush.msra.mxu0 %v702_v0  ;;  %376 = vmatpush.msra.mxu1 %v702_v0 }
  0x1d   : > { %357 = vmatpush.msra.mxu0 %v702_v0  ;;  %377 = vmatpush.msra.mxu1 %v702_v0 }
  0x1f   : > { %358 = vmatpush.msra.mxu0 %v702_v0  ;;  %378 = vmatpush.msra.mxu1 %v702_v0 }
  0x21   : > { %359 = vmatpush.msra.mxu0 %v702_v0  ;;  %379 = vmatpush.msra.mxu1 %v702_v0 }
  0x23   : > { %360 = vmatpush.msra.mxu0 %v702_v0  ;;  %380 = vmatpush.msra.mxu1 %v702_v0 }
  0x25   : > { %361 = vmatpush.msra.mxu0 %v702_v0  ;;  %381 = vmatpush.msra.mxu1 %v702_v0 }
  0x27   : > { %362 = vmatpush.msra.mxu0 %v702_v0  ;;  %382 = vmatpush.msra.mxu1 %v702_v0 }
  0x29   : > { %363 = vmatpush.msra.mxu0 %v702_v0  ;;  %383 = vmatpush.msra.mxu1 %v702_v0 }
  0x2b   : > { %364 = vmatpush.msra.mxu0 %v702_v0  ;;  %384 = vmatpush.msra.mxu1 %v702_v0 }
  0x2d   : > { %365 = vmatpush.msra.mxu0 %v702_v0  ;;  %385 = vmatpush.msra.mxu1 %v702_v0 }
  0x2e   : > { %366 = vmatmul.f32.vlgmr.msra.gmra.mxu0 %v348_v1  ;;  %386 = vmatmul.f32.vlgmr.msra.gmra.mxu1 %v349_v2 }
  0xab   : > { %v367_v3 = vpop.f32.mrf.mxu0  ;;  %v387_v4 = vpop.f32.mrf.mxu1 }
  0xac   : > { %v388_v5 = vadd.f32 %v387_v4, %v367_v3 }
  0xae   : > { %v390_v6 = vmul.f32 0.00390625, %v388_v5 }
  0xb0   : > { %411 = vmatpush.msra.mxu2 %v390_v6 }
  0xb1   : > { %642 = vmatmul.msk.f32.vlgmr.msra.gmra.mxu2 %vm392_vm0, %v391_v7 }
  0xb2   : > { %644 = vmatpush.msk.msrb.mxu2 %vm453_vm1, %v447_v8 }
  0xb9   : > { %645 = vmatmul.msk.f32.vlgmr.msrb.gmra.mxu2 %vm449_vm2, %v448_v9 }
 0x134   : > { %v413_v11 = vpop.f32.mrf.mxu2 }
 0x135   : > { %v419_v12 = vmul.f32 %v418_v10, %v413_v11  ;;  %vm417_vm3 = vcmp.ge.f32.partialorder %v413_v11, 0.0 }
 0x137   : > { %v420_v14 = vsel %vm417_vm3, %v413_v11, %v419_v12 }
 0x138   : > { %440 = vmatpush.msra.mxu3 %v420_v14 }
 0x139   : > { %643 = vmatmul.msk.f32.vlgmr.msra.gmra.mxu3 %vm392_vm0, %v421_v13 }
 0x13c   : > { %v474_v16 = vpop.f32.mrf.mxu2 }
 0x13d   : > { %vm478_vm4 = vcmp.ge.f32.partialorder %v474_v16, 0.0  ;;  %v480_v17 = vmul.f32 %v479_v15, %v474_v16 }
 0x13f   : > { %v481_v19 = vsel %vm478_vm4, %v474_v16, %v480_v17 }
 0x140   : > { %501 = vmatpush.msrb.mxu3 %v481_v19 }
 0x141   : > { %647 = vmatmul.msk.f32.vlgmr.msrb.gmra.mxu3 %vm392_vm0, %v482_v18 }
 0x1bc   : > { %v442_v21 = vpop.f32.mrf.mxu3 }
 0x1bd   : > { %446 = vst.msk [vmem:[%s347_s12] sm:$0xf] %vm445_vm5, %v442_v21 }
 0x1c4   : > { %v503_v22 = vpop.f32.mrf.mxu3 }
 0x1c5   : > { %v506_v23 = vmax.f32 %v503_v22, 0.0 }
 0x1c7   : > { %511 = vperm.xlu0 %673, %v506_v23  }
 0x239   : > { %v512_v26 = vpop.permute.xlu0 %511 }
 0x23a   : > { %v515_v27 = vsel %vm514_vm6, %v512_v26, %v348_v1  ;;  %v516_v28 = vsel %vm514_vm6, %v512_v26, %v349_v2 }
 0x23b   : > { %517 = vst [vmem:[%s343_s16] sm:$0xff] %v515_v27 }
 0x23c   : > { %518 = vst [vmem:[%s343_s16 + $0x8] sm:$0xff] %v516_v28 }
 0x23d PF: > { %s20_s27 = sadd.s32 1, %s699_s27  }
 0x23e   : > { %p17_p7 = scmp.ge.s32.totalorder %s20_s27, 4  }
 0x240   :  { %19 = sbr.rel (!%p17_p7) target bundleno = 1 (0x1), region = 98 }
 0x245   :  { %554 = vsyncpa [#allocation3], 1 }
 0x246   :  { %556 = vsyncpa [#allocation3 + $0x1], 1 }

</bundles_post_ra>
